<compile_context>
chip_gen: v7x
topology: tpu7x:2x2x1
jax: 0.10.0
libtpu: 0.0.40
codegen_flags: <defaults>
</compile_context>

<pallas_src>
import jax
import jax.numpy as jnp
from jax.experimental import pallas as pl
from jax.experimental.pallas import tpu as pltpu


def _spatial_softmax_kernel(x_ref, pos_ref, o_ref):
    # x_ref:   (TR, HW)  logits row tile (any float dtype; upcast to f32)
    # pos_ref: (2,  HW)  rows are [pos_x, pos_y], float32, constant (resident)
    # o_ref:   (TR, 2)   [expected_x, expected_y] per row, float32
    x = x_ref[...].astype(jnp.float32)                      # (TR, HW)

    # Numerically-stable softmax numerator (max reduce + exp on the EUP).
    m = jnp.max(x, axis=-1, keepdims=True)                  # (TR, 1)
    e = jnp.exp(x - m)                                      # (TR, HW)

    pos_x = pos_ref[0:1, :]                                 # (1, HW) f32
    pos_y = pos_ref[1:2, :]                                 # (1, HW) f32

    # Exact f32 VPU/XLU reductions.  Deferred normalization: only the (TR, 1)
    # results get divided, never the full (TR, HW) tile.
    s = jnp.sum(e, axis=-1, keepdims=True)                  # (TR, 1)
    sx = jnp.sum(e * pos_x, axis=-1, keepdims=True)         # (TR, 1)
    sy = jnp.sum(e * pos_y, axis=-1, keepdims=True)         # (TR, 1)

    inv = pl.reciprocal(s, approx=False)                    # (TR, 1), exact
    o_ref[:, 0:1] = (sx * inv).astype(o_ref.dtype)
    o_ref[:, 1:2] = (sy * inv).astype(o_ref.dtype)


def _vmem_limit_bytes():
    """Generation-aware scoped-VMEM limit (v5e/v6e: 128 MiB, v7x: 64 MiB/TC)."""
    cap = 64 * 1024 * 1024
    try:
        cap = int(getattr(pltpu.get_tpu_info(), "vmem_capacity_bytes", cap))
    except Exception:
        pass
    return int(min(cap * 3 // 4, 96 * 1024 * 1024))


def _choose_row_tile(rows, hw, itemsize, vmem_budget):
    """Row tile: multiple of the sublane packing for the input dtype, sized for
    ~4 MiB input blocks inside the VMEM budget, with >= 2-4 grid steps when the
    problem allows (without shrinking blocks below ~512 KiB)."""
    sub = {1: 32, 2: 16}.get(itemsize, 8)
    if rows <= sub:
        return max(1, rows)                                  # full dim is legal
    bytes_per_row = hw * itemsize
    tr_vmem = max(sub, vmem_budget // (2 * bytes_per_row))   # hard VMEM cap
    tr_target = max(sub, (4 * 1024 * 1024) // bytes_per_row) # ~4 MiB blocks
    tr = min(4096, tr_vmem, tr_target)
    # Prefer >= 4 grid steps (v7x megacore + overlap) while keeping >=512 KiB.
    tr_floor = max(sub, (512 * 1024) // bytes_per_row)
    tr = min(tr, max(rows // 4, tr_floor))
    tr = max(sub, (tr // sub) * sub)
    tr = min(tr, max(sub, (rows // sub) * sub))
    return int(tr)


@jax.jit
def spatial_softmax(x):
    """x: (N, C, H, W) -> (N, 2*C) = concat([expected_x, expected_y], axis=1)."""
    N, C, H, W = x.shape
    HW = H * W
    rows = N * C

    # Constant coordinate rows (float32 end-to-end).  Mirrors
    # torch.meshgrid(linspace(W), linspace(H), indexing='xy') then reshape(HW).
    lin_w = jnp.linspace(-1.0, 1.0, W, dtype=jnp.float32)
    lin_h = jnp.linspace(-1.0, 1.0, H, dtype=jnp.float32)
    pos_x, pos_y = jnp.meshgrid(lin_w, lin_h, indexing="xy")           # (H, W)
    pos = jnp.stack([pos_x.reshape(HW), pos_y.reshape(HW)], axis=0)    # (2, HW)

    xs = x.reshape(rows, HW)

    vmem_limit = _vmem_limit_bytes()
    itemsize = jnp.dtype(x.dtype).itemsize
    # Budget for the double-buffered input tile: half the limit minus the
    # resident (sublane-padded) position rows; output buffers are negligible.
    pos_vmem = 2 * 8 * HW * 4
    budget = max(vmem_limit // 2 - pos_vmem, 2 * 1024 * 1024)
    TR = _choose_row_tile(rows, HW, itemsize, budget)

    out_flat = pl.pallas_call(
        _spatial_softmax_kernel,
        out_shape=jax.ShapeDtypeStruct((rows, 2), jnp.float32),
        grid=(pl.cdiv(rows, TR),),                     # ragged last block OK:
        in_specs=[                                     # garbage rows discarded
            pl.BlockSpec((TR, HW), lambda i: (i, 0)),
            pl.BlockSpec((2, HW), lambda i: (0, 0)),   # constant -> fetched once
        ],
        out_specs=pl.BlockSpec((TR, 2), lambda i: (i, 0)),
        compiler_params=pltpu.CompilerParams(
            dimension_semantics=("parallel",),
            vmem_limit_bytes=vmem_limit,
        ),
    )(xs, pos)

    out = out_flat.reshape(N, C, 2)                    # (N, C, 2)
    # (N, C, 2) -> (N, 2*C): rows are [ex_0..ex_{C-1}, ey_0..ey_{C-1}]
    return jnp.concatenate([out[:, :, 0], out[:, :, 1]], axis=1)


def _reference(x):
    # Pure-JAX reference matching the PyTorch module semantics.
    N, C, H, W = x.shape
    HW = H * W
    lin_w = jnp.linspace(-1.0, 1.0, W, dtype=jnp.float32)
    lin_h = jnp.linspace(-1.0, 1.0, H, dtype=jnp.float32)
    pos_x, pos_y = jnp.meshgrid(lin_w, lin_h, indexing="xy")
    pos_x = pos_x.reshape(HW)
    pos_y = pos_y.reshape(HW)
    xs = x.reshape(N, C, HW).astype(jnp.float32)
    sm = jax.nn.softmax(xs, axis=2)
    ex = jnp.sum(pos_x * sm, axis=2)
    ey = jnp.sum(pos_y * sm, axis=2)
    return jnp.concatenate([ex, ey], axis=1)


if __name__ == "__main__":
    key = jax.random.PRNGKey(0)
    N, C, H, W = 2, 4, 16, 16
    x = jax.random.normal(key, (N, C, H, W), dtype=jnp.float32)

    out = jax.block_until_ready(spatial_softmax(x))
    ref = _reference(x)

    assert out.shape == (N, 2 * C), out.shape
    assert jnp.allclose(out, ref, atol=1e-4, rtol=1e-3), (out, ref)

    print("KERNEL_OK")
</pallas_src>

<mosaic_0001>
module attributes {stable_mosaic.version = 11 : i64} {
  func.func @_spatial_softmax_kernel(%arg0: i32, %arg1: memref<8x256xf32, #tpu.memory_space<vmem>>, %arg2: memref<2x256xf32, #tpu.memory_space<vmem>>, %arg3: memref<8x2xf32, #tpu.memory_space<vmem>>) attributes {dimension_semantics = [#tpu.dimension_semantics<parallel>], iteration_bounds = array<i64: 1>, scalar_prefetch = 0 : i64, scratch_operands = 0 : i64, tpu.core_type = #tpu.core_type<tc>, window_params = [{transform_indices = @transform_0, window_bounds = array<i64: 8, 256>}, {pipeline_mode = #tpu.pipeline_mode<synchronous>, transform_indices = @transform_1, window_bounds = array<i64: 2, 256>}, {transform_indices = @transform_2, window_bounds = array<i64: 8, 2>}]} {
    %c0 = arith.constant 0 : index
    %c0_0 = arith.constant 0 : index
    %0 = vector.load %arg1[%c0, %c0_0] : memref<8x256xf32, #tpu.memory_space<vmem>>, vector<8x256xf32>
    %cst = arith.constant dense<0xFF800000> : vector<8xf32>
    %1 = vector.multi_reduction <maximumf>, %0, %cst [1] : vector<8x256xf32> to vector<8xf32>
    %2 = vector.shape_cast %1 : vector<8xf32> to vector<8x1xf32>
    %3 = vector.broadcast %2 : vector<8x1xf32> to vector<8x256xf32>
    %4 = arith.subf %0, %3 : vector<8x256xf32>
    %5 = math.exp %4 : vector<8x256xf32>
    %c0_1 = arith.constant 0 : index
    %c0_2 = arith.constant 0 : index
    %6 = vector.load %arg2[%c0_1, %c0_2] : memref<2x256xf32, #tpu.memory_space<vmem>>, vector<1x256xf32>
    %c1 = arith.constant 1 : index
    %c0_3 = arith.constant 0 : index
    %7 = vector.load %arg2[%c1, %c0_3] : memref<2x256xf32, #tpu.memory_space<vmem>>, vector<1x256xf32>
    %cst_4 = arith.constant dense<0.000000e+00> : vector<8xf32>
    %8 = vector.multi_reduction <add>, %5, %cst_4 [1] : vector<8x256xf32> to vector<8xf32>
    %9 = vector.shape_cast %8 : vector<8xf32> to vector<8x1xf32>
    %10 = vector.broadcast %6 : vector<1x256xf32> to vector<8x256xf32>
    %11 = arith.mulf %5, %10 : vector<8x256xf32>
    %cst_5 = arith.constant dense<0.000000e+00> : vector<8xf32>
    %12 = vector.multi_reduction <add>, %11, %cst_5 [1] : vector<8x256xf32> to vector<8xf32>
    %13 = vector.shape_cast %12 : vector<8xf32> to vector<8x1xf32>
    %14 = vector.broadcast %7 : vector<1x256xf32> to vector<8x256xf32>
    %15 = arith.mulf %5, %14 : vector<8x256xf32>
    %cst_6 = arith.constant dense<0.000000e+00> : vector<8xf32>
    %16 = vector.multi_reduction <add>, %15, %cst_6 [1] : vector<8x256xf32> to vector<8xf32>
    %17 = vector.shape_cast %16 : vector<8xf32> to vector<8x1xf32>
    %18 = tpu.reciprocal %9 : vector<8x1xf32> -> vector<8x1xf32>
    %19 = arith.mulf %13, %18 : vector<8x1xf32>
    %c0_7 = arith.constant 0 : index
    %c0_8 = arith.constant 0 : index
    %20 = vector.load %arg3[%c0_7, %c0_8] : memref<8x2xf32, #tpu.memory_space<vmem>>, vector<8x1xf32>
    tpu.vector_store %arg3[%c0_7, %c0_8], %19 {strides = array<i32>} : memref<8x2xf32, #tpu.memory_space<vmem>>, vector<8x1xf32>,
    %21 = arith.mulf %17, %18 : vector<8x1xf32>
    %c0_9 = arith.constant 0 : index
    %c1_10 = arith.constant 1 : index
    %22 = vector.load %arg3[%c0_9, %c1_10] : memref<8x2xf32, #tpu.memory_space<vmem>>, vector<8x1xf32>
    tpu.vector_store %arg3[%c0_9, %c1_10], %21 {strides = array<i32>} : memref<8x2xf32, #tpu.memory_space<vmem>>, vector<8x1xf32>,
    return
  }
  func.func @transform_0(%arg0: i32) -> (i32, i32) {
    %c0_i32 = arith.constant 0 : i32
    %c0_i32_0 = arith.constant 0 : i32
    return %arg0, %c0_i32 : i32, i32
  }
  func.func @transform_1(%arg0: i32) -> (i32, i32) {
    %c0_i32 = arith.constant 0 : i32
    %c0_i32_0 = arith.constant 0 : i32
    %c0_i32_1 = arith.constant 0 : i32
    return %c0_i32, %c0_i32_0 : i32, i32
  }
  func.func @transform_2(%arg0: i32) -> (i32, i32) {
    %c0_i32 = arith.constant 0 : i32
    %c0_i32_0 = arith.constant 0 : i32
    return %arg0, %c0_i32 : i32, i32
  }
}

</mosaic_0001>

<bundles_post_ra>
// kernel: spatial_softmax.1
= control target key start
LH: loop header
LB: loop body
LE: loop exit
PB: predicated region body
PF: predicated region fallthrough
CT: control target
= control target key end

     0   :  { %v29_v4 = vlaneseq  ;;  %vm62_vm0 = vcmask 7168   ;;  %vm65_vm1 = vcmask 15368   ;;  %s111_s0 = inlined_call_operand.vmem [shape: f32[8,256], index: 0, kind: input, shape index: {}]   ;;  %s112_s1 = inlined_call_operand.vmem [shape: f32[2,256], index: 1, kind: input, shape index: {}]   ;;  %s113_s2 = inlined_call_operand.vmem [shape: f32[8,2], index: 2, kind: output, shape index: {}]  }
   0x1   :  { %v11_v0 = vld [vmem:[%s111_s0] sm:$0xff]  ;;  %v12_v1 = vld [vmem:[%s111_s0 + $0x8] sm:$0xff] }
   0x2   :  { %v13_v2 = vmax.f32 %v11_v0, %v12_v1  ;;  %v30_v9 = vshrl.u32 %v29_v4, 7  ;;  %v22_v11 = vld [vmem:[%s112_s1] ss:$2 sm:$0x3] }
   0x3   :  { %v71_v14 = vld [vmem:[%s112_s1 + $0x1] ss:$2 sm:$0x3] }
   0x4   :  { %14 = vmax.xlane.f32.xlu0 %v13_v2  ;;  %v31_v10 = vsub.s32 0, %v30_v9  ;;  %v35_v12 = vsub.s32 1, %v30_v9 }
   0x6   :  { %v32_v13 = vrot.slane %v22_v11, %v31_v10  ;;  %v36_v15 = vrot.slane %v22_v11, %v35_v12  ;;  %v48_v17 = vrot.slane %v71_v14, %v31_v10  ;;  %v52_v18 = vrot.slane %v71_v14, %v35_v12 }
  0x91   :  { %v15_v3 = vpop.xlane.xlu0 %14 }
  0x92   :  { %v16_v5 = vsub.f32 %v11_v0, %v15_v3  ;;  %v17_v6 = vsub.f32 %v12_v1, %v15_v3 }
  0x94   :  { %v18_v7 = vmul.f32 1.442695, %v16_v5  ;;  %v20_v8 = vmul.f32 1.442695, %v17_v6 }
  0x96   :  { %72 = vpow2.f32 %v18_v7 }
  0x97   :  { %74 = vpow2.f32 %v20_v8 }
  0xa0   :  { %v73_v16 = vpop.eup %72 }
  0xa1   :  { %v75_v19 = vpop.eup %74  ;;  %v39_v20 = vmul.f32 %v73_v16, %v32_v13  ;;  %v55_v24 = vmul.f32 %v73_v16, %v48_v17 }
  0xa2   :  { %v25_v21 = vadd.f32 %v75_v19, %v73_v16  ;;  %v40_v22 = vmul.f32 %v75_v19, %v36_v15  ;;  %v56_v25 = vmul.f32 %v75_v19, %v52_v18 }
  0xa4   :  { %26 = vadd.xlane.f32.xlu0 %v25_v21  ;;  %v41_v23 = vadd.f32 %v40_v22, %v39_v20  ;;  %v57_v26 = vadd.f32 %v56_v25, %v55_v24 }
  0xa6   :  { %42 = vadd.xlane.f32.xlu1 %v41_v23 }
  0xaa   :  { %58 = vadd.xlane.f32.xlu1 %v57_v26 }
 0x131   :  { %v27_v27 = vpop.xlane.xlu0 %26 }
 0x132   :  { %76 = vrcp.f32 %v27_v27 }
 0x133   :  { %v43_v28 = vpop.xlane.xlu1 %42 }
 0x137   :  { %v59_v30 = vpop.xlane.xlu1 %58 }
 0x13c   :  { %v77_v29 = vpop.eup %76 }
 0x13d   :  { %v61_v31 = vmul.f32 %v77_v29, %v43_v28  ;;  %v64_v32 = vmul.f32 %v77_v29, %v59_v30 }
 0x13f   :  { %63 = vst.msk [vmem:[%s113_s2] sm:$0xff] %vm62_vm0, %v61_v31 }
 0x140   :  { %66 = vst.msk [vmem:[%s113_s2] sm:$0xff] %vm65_vm1, %v64_v32 }

</bundles_post_ra>
